<compile_context>
chip_gen: v7x
topology: tpu7x:2x2x1
jax: 0.10.0
libtpu: 0.0.40
codegen_flags: <defaults>
</compile_context>

<pallas_src>
from functools import partial

import jax
import jax.numpy as jnp
from jax.experimental import pallas as pl
from jax.experimental.pallas import tpu as pltpu


def _round_up(n, m):
    return ((n + m - 1) // m) * m


def _pick_hidden_chunk(c_hidden, target=512):
    """Largest chunk <= target that divides c_hidden (prefer multiples of 128)."""
    if c_hidden <= target:
        return c_hidden
    for ck in range(target, 0, -128):
        if ck > 0 and c_hidden % ck == 0:
            return ck
    return c_hidden  # fallback: no chunking


def _transition_kernel(x_ref, mask_ref, g_ref, b_ref, w1_ref, b1_ref,
                       w2_ref, b2_ref, o_ref, *, chunk, n_chunks):
    # x_ref: [TM, C]   mask_ref: [TM, 1]
    # g/b: [1, C] f32   w1: [C, H] bf16   b1: [1, H] f32
    # w2: [H, C] bf16   b2: [1, C] f32
    x = x_ref[...].astype(jnp.float32)

    # LayerNorm over last dim, one-pass statistics (torch default eps=1e-5).
    mean = jnp.mean(x, axis=-1, keepdims=True)
    mean_sq = jnp.mean(x * x, axis=-1, keepdims=True)
    var = jnp.maximum(mean_sq - mean * mean, 0.0)
    inv = jax.lax.rsqrt(var + 1e-5)
    xn = (x - mean) * inv * g_ref[...] + b_ref[...]

    # bf16 MXU inputs, f32 accumulation.
    xn_lo = xn.astype(w1_ref.dtype)

    acc = jnp.zeros(o_ref.shape, jnp.float32)
    # Static unrolled loop over hidden-dim chunks: keeps the [TM, chunk]
    # intermediate in vregs instead of spilling a full [TM, 4*C] f32 tensor.
    for c in range(n_chunks):
        c0 = c * chunk
        h = jnp.dot(xn_lo, w1_ref[:, c0:c0 + chunk],
                    preferred_element_type=jnp.float32)
        h = jnp.maximum(h + b1_ref[:, c0:c0 + chunk], 0.0)
        acc = acc + jnp.dot(h.astype(w2_ref.dtype), w2_ref[c0:c0 + chunk, :],
                            preferred_element_type=jnp.float32)

    y = (acc + b2_ref[...]) * mask_ref[...].astype(jnp.float32)
    o_ref[...] = y.astype(o_ref.dtype)


def transition_pallas(x, mask, params, *, tm=512, hidden_chunk=512):
    """x: [*, c_in], mask: [*,] or None. Returns [*, c_in]."""
    c_in = x.shape[-1]
    lead = x.shape[:-1]
    M = 1
    for d in lead:
        M *= d

    x2 = x.reshape(M, c_in)
    if mask is None:
        mask2 = jnp.ones((M, 1), dtype=x.dtype)
    else:
        mask2 = mask.reshape(M, 1).astype(x.dtype)

    g, b, b1, b2 = params["ln_g"], params["ln_b"], params["b1"], params["b2"]
    # bf16 weights for the MXU; accumulation stays f32 inside the kernel.
    w1 = params["w1"].astype(jnp.bfloat16)
    w2 = params["w2"].astype(jnp.bfloat16)
    c_hidden = w1.shape[1]

    chunk = _pick_hidden_chunk(c_hidden, hidden_chunk)
    n_chunks = c_hidden // chunk

    # Row tile: big for pipeline efficiency, but capped so small problems keep
    # a few grid steps (megacore sharding) and don't over-pad.
    tm_eff = max(8, min(tm, _round_up(M, 8)))
    min_steps = 4
    if M > min_steps * 8:
        tm_eff = min(tm_eff, _round_up(pl.cdiv(M, min_steps), 8))

    M_pad = _round_up(M, tm_eff)
    if M_pad != M:
        # zero padding: padded rows give var=0 -> finite rsqrt(1e-5), no NaNs,
        # and they are sliced off before returning.
        x2 = jnp.pad(x2, ((0, M_pad - M), (0, 0)))
        mask2 = jnp.pad(mask2, ((0, M_pad - M), (0, 0)))

    grid = (M_pad // tm_eff,)

    # VMEM budget (double-buffered inputs/outputs + weights + live intermediates),
    # clamped so it is accepted on v5e/v6e (128 MiB) and on v7x (64 MiB).
    xb = jnp.dtype(x.dtype).itemsize
    vmem_needed = (
        2 * tm_eff * c_in * xb            # x tile (double-buffered)
        + 2 * tm_eff * 1 * xb             # mask tile
        + 2 * tm_eff * c_in * xb          # out tile
        + 2 * (c_in * c_hidden + c_hidden * c_in) * 2   # w1, w2 (bf16)
        + 2 * (2 * c_in + c_hidden + c_in) * 4          # ln_g, ln_b, b1, b2
        + tm_eff * (chunk + 3 * c_in) * 4               # in-flight intermediates
    )
    vmem_limit = min(max(2 * vmem_needed, 16 * 1024 * 1024), 64 * 1024 * 1024)

    cost = pl.CostEstimate(
        flops=2 * 2 * M_pad * c_in * c_hidden + 10 * M_pad * c_in,
        transcendentals=M_pad,
        bytes_accessed=(2 * M_pad * c_in * xb + M_pad * xb
                        + 2 * c_in * c_hidden * 2
                        + (c_hidden + 3 * c_in) * 4),
    )

    kernel = partial(_transition_kernel, chunk=chunk, n_chunks=n_chunks)

    # TODO(synk): constant operands (ln/w/b) could be single-buffered via
    # pipeline_mode=pl.Buffered(1) to halve their VMEM footprint on v7x.
    out = pl.pallas_call(
        kernel,
        out_shape=jax.ShapeDtypeStruct((M_pad, c_in), x.dtype),
        grid_spec=pltpu.PrefetchScalarGridSpec(
            num_scalar_prefetch=0,
            grid=grid,
            in_specs=[
                pl.BlockSpec((tm_eff, c_in), lambda i: (i, 0)),      # x tile
                pl.BlockSpec((tm_eff, 1), lambda i: (i, 0)),         # mask tile
                pl.BlockSpec((1, c_in), lambda i: (0, 0)),           # ln gamma
                pl.BlockSpec((1, c_in), lambda i: (0, 0)),           # ln beta
                pl.BlockSpec((c_in, c_hidden), lambda i: (0, 0)),    # w1 (bf16)
                pl.BlockSpec((1, c_hidden), lambda i: (0, 0)),       # b1
                pl.BlockSpec((c_hidden, c_in), lambda i: (0, 0)),    # w2 (bf16)
                pl.BlockSpec((1, c_in), lambda i: (0, 0)),           # b2
            ],
            out_specs=pl.BlockSpec((tm_eff, c_in), lambda i: (i, 0)),
        ),
        compiler_params=pltpu.CompilerParams(
            dimension_semantics=("parallel",),
            vmem_limit_bytes=int(vmem_limit)),
        cost_estimate=cost,
    )(x2, mask2, g, b, w1, b1, w2, b2)

    return out[:M].reshape(*lead, c_in)


def init_params(c_in, n=4, dtype=jnp.float32):
    """Deterministic synthetic parameters matching the module's __init__ shapes."""
    c_hidden = n * c_in
    k = jax.random.PRNGKey(0)
    k1, k2 = jax.random.split(k)
    # linear_1 init='relu' (he); linear_2 init='final' (zeros in OpenFold) —
    # use small random weights for linear_2 so output is non-trivial to check.
    w1 = (jax.random.normal(k1, (c_in, c_hidden), dtype)
          * jnp.sqrt(2.0 / c_in).astype(dtype))
    w2 = jax.random.normal(k2, (c_hidden, c_in), dtype) * jnp.asarray(0.02, dtype)
    return {
        "ln_g": jnp.ones((1, c_in), dtype),
        "ln_b": jnp.zeros((1, c_in), dtype),
        "w1": w1,
        "b1": jnp.zeros((1, c_hidden), dtype),
        "w2": w2,
        "b2": jnp.zeros((1, c_in), dtype),
    }


def transition_ref(x, mask, params):
    """Pure-JAX f32 reference for correctness checking."""
    xf = x.astype(jnp.float32)
    mean = jnp.mean(xf, axis=-1, keepdims=True)
    var = jnp.mean((xf - mean) ** 2, axis=-1, keepdims=True)
    xn = (xf - mean) * jax.lax.rsqrt(var + 1e-5) * params["ln_g"][0] + params["ln_b"][0]
    h = jnp.maximum(xn @ params["w1"] + params["b1"][0], 0.0)
    y = h @ params["w2"] + params["b2"][0]
    if mask is not None:
        y = y * mask[..., None]
    return y.astype(x.dtype)


if __name__ == "__main__":
    # MSA-like shapes: [n_seq, n_res, c_in] = [8, 16, 32], mask [8, 16]
    c_in, n = 32, 4
    key = jax.random.PRNGKey(0)
    kx, km = jax.random.split(key)
    x = jax.random.normal(kx, (8, 16, c_in), jnp.float32)
    mask = (jax.random.uniform(km, (8, 16)) > 0.2).astype(jnp.float32)

    params = init_params(c_in, n)

    out = transition_pallas(x, mask, params)
    out = jax.block_until_ready(out)

    ref = transition_ref(x, mask, params)
    assert out.shape == x.shape, (out.shape, x.shape)
    # bf16 matmul inputs with f32 accumulation -> slightly looser tolerance.
    assert jnp.allclose(out, ref, atol=2e-2, rtol=2e-2), \
        float(jnp.max(jnp.abs(out - ref)))

    print("KERNEL_OK")
</pallas_src>

<mosaic_0001>
module attributes {stable_mosaic.version = 11 : i64} {
  func.func @_transition_kernel(%arg0: i32, %arg1: memref<32x32xf32, #tpu.memory_space<vmem>>, %arg2: memref<32x1xf32, #tpu.memory_space<vmem>>, %arg3: memref<1x32xf32, #tpu.memory_space<vmem>>, %arg4: memref<1x32xf32, #tpu.memory_space<vmem>>, %arg5: memref<32x128xbf16, #tpu.memory_space<vmem>>, %arg6: memref<1x128xf32, #tpu.memory_space<vmem>>, %arg7: memref<128x32xbf16, #tpu.memory_space<vmem>>, %arg8: memref<1x32xf32, #tpu.memory_space<vmem>>, %arg9: memref<32x32xf32, #tpu.memory_space<vmem>>) attributes {dimension_semantics = [#tpu.dimension_semantics<parallel>], iteration_bounds = array<i64: 4>, scalar_prefetch = 0 : i64, scratch_operands = 0 : i64, tpu.core_type = #tpu.core_type<tc>, window_params = [{transform_indices = @transform_0, window_bounds = array<i64: 32, 32>}, {transform_indices = @transform_1, window_bounds = array<i64: 32, 1>}, {pipeline_mode = #tpu.pipeline_mode<synchronous>, transform_indices = @transform_2, window_bounds = array<i64: 1, 32>}, {pipeline_mode = #tpu.pipeline_mode<synchronous>, transform_indices = @transform_3, window_bounds = array<i64: 1, 32>}, {pipeline_mode = #tpu.pipeline_mode<synchronous>, transform_indices = @transform_4, window_bounds = array<i64: 32, 128>}, {pipeline_mode = #tpu.pipeline_mode<synchronous>, transform_indices = @transform_5, window_bounds = array<i64: 1, 128>}, {pipeline_mode = #tpu.pipeline_mode<synchronous>, transform_indices = @transform_6, window_bounds = array<i64: 128, 32>}, {pipeline_mode = #tpu.pipeline_mode<synchronous>, transform_indices = @transform_7, window_bounds = array<i64: 1, 32>}, {transform_indices = @transform_8, window_bounds = array<i64: 32, 32>}]} {
    %c0 = arith.constant 0 : index
    %c0_0 = arith.constant 0 : index
    %0 = vector.load %arg1[%c0, %c0_0] : memref<32x32xf32, #tpu.memory_space<vmem>>, vector<32x32xf32>
    %cst = arith.constant dense<0.000000e+00> : vector<32xf32>
    %1 = vector.multi_reduction <add>, %0, %cst [1] : vector<32x32xf32> to vector<32xf32>
    %2 = vector.shape_cast %1 : vector<32xf32> to vector<32x1xf32>
    %cst_1 = arith.constant 3.200000e+01 : f32
    %3 = vector.broadcast %cst_1 : f32 to vector<32x1xf32>
    %4 = arith.divf %2, %3 : vector<32x1xf32>
    %5 = arith.mulf %0, %0 : vector<32x32xf32>
    %cst_2 = arith.constant dense<0.000000e+00> : vector<32xf32>
    %6 = vector.multi_reduction <add>, %5, %cst_2 [1] : vector<32x32xf32> to vector<32xf32>
    %7 = vector.shape_cast %6 : vector<32xf32> to vector<32x1xf32>
    %cst_3 = arith.constant 3.200000e+01 : f32
    %8 = vector.broadcast %cst_3 : f32 to vector<32x1xf32>
    %9 = arith.divf %7, %8 : vector<32x1xf32>
    %10 = arith.mulf %4, %4 : vector<32x1xf32>
    %11 = arith.subf %9, %10 : vector<32x1xf32>
    %cst_4 = arith.constant 0.000000e+00 : f32
    %12 = vector.broadcast %cst_4 : f32 to vector<32x1xf32>
    %13 = arith.maximumf %11, %12 : vector<32x1xf32>
    %cst_5 = arith.constant 9.99999974E-6 : f32
    %14 = vector.broadcast %cst_5 : f32 to vector<32x1xf32>
    %15 = arith.addf %13, %14 : vector<32x1xf32>
    %16 = math.rsqrt %15 : vector<32x1xf32>
    %17 = vector.broadcast %4 : vector<32x1xf32> to vector<32x32xf32>
    %18 = arith.subf %0, %17 : vector<32x32xf32>
    %19 = vector.broadcast %16 : vector<32x1xf32> to vector<32x32xf32>
    %20 = arith.mulf %18, %19 : vector<32x32xf32>
    %c0_6 = arith.constant 0 : index
    %c0_7 = arith.constant 0 : index
    %21 = vector.load %arg3[%c0_6, %c0_7] : memref<1x32xf32, #tpu.memory_space<vmem>>, vector<1x32xf32>
    %22 = vector.broadcast %21 : vector<1x32xf32> to vector<32x32xf32>
    %23 = arith.mulf %20, %22 : vector<32x32xf32>
    %c0_8 = arith.constant 0 : index
    %c0_9 = arith.constant 0 : index
    %24 = vector.load %arg4[%c0_8, %c0_9] : memref<1x32xf32, #tpu.memory_space<vmem>>, vector<1x32xf32>
    %25 = vector.broadcast %24 : vector<1x32xf32> to vector<32x32xf32>
    %26 = arith.addf %23, %25 : vector<32x32xf32>
    %27 = arith.truncf %26 : vector<32x32xf32> to vector<32x32xbf16>
    %cst_10 = arith.constant 0.000000e+00 : f32
    %28 = vector.broadcast %cst_10 : f32 to vector<32x32xf32>
    %c0_11 = arith.constant 0 : index
    %c0_12 = arith.constant 0 : index
    %29 = vector.load %arg5[%c0_11, %c0_12] : memref<32x128xbf16, #tpu.memory_space<vmem>>, vector<32x128xbf16>
    %cst_13 = arith.constant dense<0.000000e+00> : vector<32x128xf32>
    %30 = tpu.matmul %27, %29, %cst_13 {dimension_numbers = #tpu.dot_dimension_numbers<[1], [0], [0], [1], [0, 0, 1, 1], [], []>} : vector<32x32xbf16>, vector<32x128xbf16>, vector<32x128xf32> -> vector<32x128xf32>
    %c0_14 = arith.constant 0 : index
    %c0_15 = arith.constant 0 : index
    %31 = vector.load %arg6[%c0_14, %c0_15] : memref<1x128xf32, #tpu.memory_space<vmem>>, vector<1x128xf32>
    %32 = vector.broadcast %31 : vector<1x128xf32> to vector<32x128xf32>
    %33 = arith.addf %30, %32 : vector<32x128xf32>
    %cst_16 = arith.constant 0.000000e+00 : f32
    %34 = vector.broadcast %cst_16 : f32 to vector<32x128xf32>
    %35 = arith.maximumf %33, %34 : vector<32x128xf32>
    %36 = arith.truncf %35 : vector<32x128xf32> to vector<32x128xbf16>
    %c0_17 = arith.constant 0 : index
    %c0_18 = arith.constant 0 : index
    %37 = vector.load %arg7[%c0_17, %c0_18] : memref<128x32xbf16, #tpu.memory_space<vmem>>, vector<128x32xbf16>
    %cst_19 = arith.constant dense<0.000000e+00> : vector<32x32xf32>
    %38 = tpu.matmul %36, %37, %cst_19 {dimension_numbers = #tpu.dot_dimension_numbers<[1], [0], [0], [1], [0, 0, 1, 1], [], []>} : vector<32x128xbf16>, vector<128x32xbf16>, vector<32x32xf32> -> vector<32x32xf32>
    %39 = arith.addf %28, %38 : vector<32x32xf32>
    %c0_20 = arith.constant 0 : index
    %c0_21 = arith.constant 0 : index
    %40 = vector.load %arg8[%c0_20, %c0_21] : memref<1x32xf32, #tpu.memory_space<vmem>>, vector<1x32xf32>
    %41 = vector.broadcast %40 : vector<1x32xf32> to vector<32x32xf32>
    %42 = arith.addf %39, %41 : vector<32x32xf32>
    %c0_22 = arith.constant 0 : index
    %c0_23 = arith.constant 0 : index
    %43 = vector.load %arg2[%c0_22, %c0_23] : memref<32x1xf32, #tpu.memory_space<vmem>>, vector<32x1xf32>
    %44 = vector.broadcast %43 : vector<32x1xf32> to vector<32x32xf32>
    %45 = arith.mulf %42, %44 : vector<32x32xf32>
    %c0_24 = arith.constant 0 : index
    %c0_25 = arith.constant 0 : index
    %46 = vector.load %arg9[%c0_24, %c0_25] : memref<32x32xf32, #tpu.memory_space<vmem>>, vector<32x32xf32>
    tpu.vector_store %arg9[%c0_24, %c0_25], %45 {strides = array<i32>} : memref<32x32xf32, #tpu.memory_space<vmem>>, vector<32x32xf32>,
    return
  }
  func.func @transform_0(%arg0: i32) -> (i32, i32) {
    %c0_i32 = arith.constant 0 : i32
    %c0_i32_0 = arith.constant 0 : i32
    return %arg0, %c0_i32 : i32, i32
  }
  func.func @transform_1(%arg0: i32) -> (i32, i32) {
    %c0_i32 = arith.constant 0 : i32
    %c0_i32_0 = arith.constant 0 : i32
    return %arg0, %c0_i32 : i32, i32
  }
  func.func @transform_2(%arg0: i32) -> (i32, i32) {
    %c0_i32 = arith.constant 0 : i32
    %c0_i32_0 = arith.constant 0 : i32
    %c0_i32_1 = arith.constant 0 : i32
    return %c0_i32, %c0_i32_0 : i32, i32
  }
  func.func @transform_3(%arg0: i32) -> (i32, i32) {
    %c0_i32 = arith.constant 0 : i32
    %c0_i32_0 = arith.constant 0 : i32
    %c0_i32_1 = arith.constant 0 : i32
    return %c0_i32, %c0_i32_0 : i32, i32
  }
  func.func @transform_4(%arg0: i32) -> (i32, i32) {
    %c0_i32 = arith.constant 0 : i32
    %c0_i32_0 = arith.constant 0 : i32
    %c0_i32_1 = arith.constant 0 : i32
    return %c0_i32, %c0_i32_0 : i32, i32
  }
  func.func @transform_5(%arg0: i32) -> (i32, i32) {
    %c0_i32 = arith.constant 0 : i32
    %c0_i32_0 = arith.constant 0 : i32
    %c0_i32_1 = arith.constant 0 : i32
    return %c0_i32, %c0_i32_0 : i32, i32
  }
  func.func @transform_6(%arg0: i32) -> (i32, i32) {
    %c0_i32 = arith.constant 0 : i32
    %c0_i32_0 = arith.constant 0 : i32
    %c0_i32_1 = arith.constant 0 : i32
    return %c0_i32, %c0_i32_0 : i32, i32
  }
  func.func @transform_7(%arg0: i32) -> (i32, i32) {
    %c0_i32 = arith.constant 0 : i32
    %c0_i32_0 = arith.constant 0 : i32
    %c0_i32_1 = arith.constant 0 : i32
    return %c0_i32, %c0_i32_0 : i32, i32
  }
  func.func @transform_8(%arg0: i32) -> (i32, i32) {
    %c0_i32 = arith.constant 0 : i32
    %c0_i32_0 = arith.constant 0 : i32
    return %arg0, %c0_i32 : i32, i32
  }
}

</mosaic_0001>

<bundles_post_ra>
// kernel: tpu_custom_call.1
= control target key start
LH: loop header
LB: loop body
LE: loop exit
PB: predicated region body
PF: predicated region fallthrough
CT: control target
= control target key end

     0   :  { %s884_s27 = smov 0   ;;  %s989_s0 = inlined_call_operand.vmem [shape: f32[128,32], index: 0, kind: input, shape index: {}]   ;;  %s990_s1 = inlined_call_operand.vmem [shape: f32[128,1], index: 1, kind: input, shape index: {}]   ;;  %s991_s2 = inlined_call_operand.vmem [shape: f32[1,32], index: 2, kind: input, shape index: {}]   ;;  %s992_s3 = inlined_call_operand.vmem [shape: f32[1,32], index: 3, kind: input, shape index: {}]   ;;  %s993_s4 = inlined_call_operand.vmem [shape: bf16[32,128], index: 4, kind: input, shape index: {}]   ;;  %s994_s5 = inlined_call_operand.vmem [shape: f32[1,128], index: 5, kind: input, shape index: {}]   ;;  %s995_s6 = inlined_call_operand.vmem [shape: bf16[128,32], index: 6, kind: input, shape index: {}]   ;;  %s996_s7 = inlined_call_operand.vmem [shape: f32[1,32], index: 7, kind: input, shape index: {}]   ;;  %s997_s8 = inlined_call_operand.vmem [shape: f32[128,32], index: 8, kind: output, shape index: {}]  }
   0x1 LB: > { %s730_s28 = sadd.s32 4294967295, %s836_s27   ;;  %p734_p0 = scmp.ge.s32.totalorder %s836_s27, 1  ;;  %s836_s27 = sphi %s884_s27, %s18_s27  }
   0x2   : > { %p274_p1 = scmp.lt.s32.totalorder %s836_s27, 5 }
   0x4   : > { %p275_p2 = pnand %p734_p0, %p274_p1 }
   0x5   : > { %s735_s29 = sshll.u32 (!%p275_p2), %s730_s28, 2  ;;  %vm336_vm0 = vcmask (!%p275_p2), 261120   ;;  %v812_v16 = vld [vmem:[%s993_s4] sm:$0xff] (!%p275_p2)   ;;  %v813_v17 = vld [vmem:[%s993_s4 + $0x8] sm:$0xff] (!%p275_p2)   ;;  %v816_v20 = vld [vmem:[%s995_s6 + $0x10] sm:$0xff] (!%p275_p2)  }
   0x6   : > { %278 = sbr.rel (%p275_p2) target bundleno = 642 (0x282), region = 52  ;;  %p314_p3 = scmp.lt.s32.totalorder (!%p275_p2), %s735_s29, 15  ;;  %773 = vmatprep.subr.bf16.mxu0 (!%p275_p2), %v812_v16  ;;  %v814_v18 = vld [vmem:[%s995_s6] sm:$0xff] (!%p275_p2)   ;;  %v815_v19 = vld [vmem:[%s995_s6 + $0x8] sm:$0xff] (!%p275_p2)   ;;  %v817_v21 = vld [vmem:[%s995_s6 + $0x18] sm:$0xff] (!%p275_p2)  }
   0x7   : > { %774 = vmatpush3.bf16.msra.mxu0 (!%p275_p2), %v812_v16  ;;  %781 = vmatprep.subr.bf16.mxu1 (!%p275_p2), %v814_v18  ;;  %v818_v22 = vld [vmem:[%s995_s6 + $0x20] sm:$0xff] (!%p275_p2)   ;;  %v819_v23 = vld [vmem:[%s995_s6 + $0x28] sm:$0xff] (!%p275_p2)  }
   0x8   : > { %775 = vmatprep.subr.bf16.mxu0 (!%p275_p2), %v813_v17  ;;  %782 = vmatpush3.bf16.msra.mxu1 (!%p275_p2), %v814_v18  ;;  %v741_v59 = vld [vmem:[%s991_s2] ss:$0 sm:$0xff] (!%p275_p2)  ;;  %v838_v18 = vmov (!%p275_p2), 0  }
   0x9   : > { %783 = vmatprep.subr.bf16.mxu1 (!%p275_p2), %v815_v19  ;;  %v742_v63 = vld [vmem:[%s992_s3] ss:$0 sm:$0xff] (!%p275_p2)  ;;  %811 = vset.pattern.permute.xlu1 (!%p275_p2), %v838_v18 }
   0xa   : > { %810 = vset.pattern.permute.xlu0 (!%p275_p2), %v838_v18 }
   0xb   : > { %776 = vmatpush3.bf16.msra.mxu0 (!%p275_p2), %v813_v17 }
   0xc   : > { %784 = vmatpush3.bf16.msra.mxu1 (!%p275_p2), %v815_v19 }
   0xd   : > { %s999_s29 = smov (!%p314_p3, %s735_s29), 15  ;;  %785 = vmatprep.subr.bf16.mxu1 %v816_v20 }
   0xe   : > { %s892_s30 = sshll.u32 %s999_s29, 3 }
   0xf   : > { %s317_s11 = scalar_lea.vmem %s989_s0, %s892_s30  ;;  %s323_s18 = scalar_lea.vmem %s990_s1, %s892_s30 }
  0x10   : > { %v898_v0 = vld [vmem:[%s317_s11 + $0x10] sm:$0xff]  ;;  %v900_v1 = vld [vmem:[%s317_s11] sm:$0xff]  ;;  %v902_v2 = vld [vmem:[%s317_s11 + $0x18] sm:$0xff]  ;;  %786 = vmatpush3.bf16.msra.mxu1 %v816_v20  ;;  %s329_s25 = scalar_lea.vmem %s997_s8, %s892_s30 }
  0x11   : > { %v343_v3 = vsel %vm336_vm0, %v898_v0, 0.0  ;;  %v337_v4 = vsel %vm336_vm0, %v900_v1, 0.0  ;;  %v908_v5 = vld [vmem:[%s317_s11 + $0x8] sm:$0xff]  ;;  %v346_v6 = vsel %vm336_vm0, %v902_v2, 0.0  ;;  %v354_v9 = vmul.f32 %v900_v1, %v900_v1  ;;  %787 = vmatprep.subr.bf16.mxu1 %v817_v21  ;;  %v630_v20 = vld [vmem:[%s323_s18] sm:$0xff] }
  0x12   : > { %344 = vadd.xlane.f32.xlu1 %v343_v3  ;;  %338 = vadd.xlane.f32.xlu0 %v337_v4  ;;  %v340_v7 = vsel %vm336_vm0, %v908_v5, 0.0  ;;  %v355_v8 = vmul.f32 %v908_v5, %v908_v5  ;;  %v357_v12 = vmul.f32 %v902_v2, %v902_v2  ;;  %v356_v13 = vmul.f32 %v898_v0, %v898_v0  ;;  %v631_v19 = vld [vmem:[%s323_s18 + $0x8] sm:$0xff] }
  0x13   : > { %v358_v11 = vsel %vm336_vm0, %v354_v9, 0.0 }
  0x14   : > { %v361_v10 = vsel %vm336_vm0, %v355_v8, 0.0  ;;  %v367_v14 = vsel %vm336_vm0, %v357_v12, 0.0  ;;  %v364_v15 = vsel %vm336_vm0, %v356_v13, 0.0  ;;  %788 = vmatpush3.bf16.msra.mxu1 %v817_v21  ;;  %v632_v21 = vld [vmem:[%s323_s18 + $0x10] sm:$0xff] }
  0x15   : > { %789 = vmatprep.subr.bf16.mxu1 %v818_v22 }
  0x16   : > { %347 = vadd.xlane.f32.xlu1 %v346_v6  ;;  %341 = vadd.xlane.f32.xlu0 %v340_v7 }
  0x18   : > { %790 = vmatpush3.bf16.msra.mxu1 %v818_v22  ;;  %v633_v22 = vld [vmem:[%s323_s18 + $0x18] sm:$0xff] }
  0x19   : > { %791 = vmatprep.subr.bf16.mxu1 %v819_v23 }
  0x1a   : > { %362 = vadd.xlane.f32.xlu1 %v361_v10  ;;  %359 = vadd.xlane.f32.xlu0 %v358_v11 }
  0x1c   : > { %792 = vmatpush3.bf16.msra.mxu1 %v819_v23  ;;  %v743_v23 = vld [vmem:[%s994_s5] ss:$0 sm:$0xff] }
  0x1e   : > { %368 = vadd.xlane.f32.xlu1 %v367_v14  ;;  %365 = vadd.xlane.f32.xlu0 %v364_v15 }
  0x2f   : > { %641 = vperm.xlu1 %811, %v631_v19  }
  0x33   : > { %646 = vperm.xlu1 %811, %v632_v21  }
  0x34   : > { %636 = vperm.xlu0 %810, %v630_v20  }
  0x37   : > { %651 = vperm.xlu1 %811, %v633_v22  }
  0x9f   : > { %v345_v24 = vpop.xlane.xlu1 %344  ;;  %v339_v25 = vpop.xlane.xlu0 %338 }
  0xa0   : > { %v350_v28 = vmul.f32 0.03125, %v339_v25  ;;  %v352_v30 = vmul.f32 0.03125, %v345_v24 }
  0xa2   : > { %v374_v34 = vmul.f32 %v350_v28, %v350_v28  ;;  %v376_v40 = vmul.f32 %v352_v30, %v352_v30  ;;  %v394_v58 = vsub.f32 %v900_v1, %v350_v28 }
  0xa3   : > { %v348_v26 = vpop.xlane.xlu1 %347  ;;  %v342_v27 = vpop.xlane.xlu0 %341 }
  0xa4   : > { %v351_v29 = vmul.f32 0.03125, %v342_v27  ;;  %v353_v31 = vmul.f32 0.03125, %v348_v26 }
  0xa6   : > { %v375_v35 = vmul.f32 %v351_v29, %v351_v29  ;;  %v377_v41 = vmul.f32 %v353_v31, %v353_v31  ;;  %v395_v56 = vsub.f32 %v908_v5, %v351_v29  ;;  %v397_v3 = vsub.f32 %v902_v2, %v353_v31  ;;  %v821_v2 = vld [vmem:[%s995_s6 + $0x38] sm:$0xff]  }
  0xa7   : > { %v363_v32 = vpop.xlane.xlu1 %362  ;;  %v360_v33 = vpop.xlane.xlu0 %359  ;;  %v396_v5 = vsub.f32 %v898_v0, %v352_v30  ;;  %v820_v0 = vld [vmem:[%s995_s6 + $0x30] sm:$0xff]  }
  0xa8   : > { %v371_v36 = vmul.f32 0.03125, %v363_v32  ;;  %v370_v37 = vmul.f32 0.03125, %v360_v33  ;;  %793 = vmatprep.subr.bf16.mxu1 %v820_v0 }
  0xa9   : > { %794 = vmatpush3.bf16.msra.mxu1 %v820_v0 }
  0xaa   : > { %v379_v38 = vsub.f32 %v371_v36, %v375_v35  ;;  %v378_v39 = vsub.f32 %v370_v37, %v374_v34  ;;  %795 = vmatprep.subr.bf16.mxu1 %v821_v2 }
  0xab   : > { %v369_v42 = vpop.xlane.xlu1 %368  ;;  %v366_v43 = vpop.xlane.xlu0 %365 }
  0xac   : > { %v383_v44 = vmax.f32 %v379_v38, 0.0  ;;  %v382_v45 = vmax.f32 %v378_v39, 0.0  ;;  %v373_v46 = vmul.f32 0.03125, %v369_v42  ;;  %v372_v47 = vmul.f32 0.03125, %v366_v43 }
  0xad   : > { %796 = vmatpush3.bf16.msra.mxu1 %v821_v2 }
  0xae   : > { %v387_v48 = vadd.f32 1e-05, %v383_v44  ;;  %v386_v49 = vadd.f32 1e-05, %v382_v45  ;;  %v381_v50 = vsub.f32 %v373_v46, %v377_v41  ;;  %v380_v51 = vsub.f32 %v372_v47, %v376_v40  ;;  %v748_v40 = vld [vmem:[%s996_s7] ss:$0 sm:$0xff] }
  0xaf   : > { %v642_v38 = vpop.permute.xlu1 %641 }
  0xb0   : > { %822 = vrsqrt.f32 %v387_v48  ;;  %v385_v52 = vmax.f32 %v381_v50, 0.0  ;;  %v384_v53 = vmax.f32 %v380_v51, 0.0 }
  0xb1   : > { %824 = vrsqrt.f32 %v386_v49 }
  0xb2   : > { %v389_v54 = vadd.f32 1e-05, %v385_v52  ;;  %v388_v55 = vadd.f32 1e-05, %v384_v53 }
  0xb3   : > { %v647_v39 = vpop.permute.xlu1 %646  ;;  %v637_v44 = vpop.permute.xlu0 %636 }
  0xb4   : > { %826 = vrsqrt.f32 %v389_v54 }
  0xb5   : > { %828 = vrsqrt.f32 %v388_v55 }
  0xb7   : > { %v652_v50 = vpop.permute.xlu1 %651 }
  0xba   : > { %v823_v57 = vpop.eup %822 }
  0xbb   : > { %v825_v60 = vpop.eup %824  ;;  %v399_v61 = vmul.f32 %v823_v57, %v395_v56 }
  0xbc   : > { %v398_v62 = vmul.f32 %v825_v60, %v394_v58 }
  0xbd   : > { %v410_v4 = vmul.f32 %v741_v59, %v399_v61 }
  0xbe   : > { %v827_v6 = vpop.eup %826  ;;  %v409_v7 = vmul.f32 %v741_v59, %v398_v62 }
  0xbf   : > { %v829_v8 = vpop.eup %828  ;;  %v421_v1 = vadd.f32 %v742_v63, %v410_v4  ;;  %v401_v9 = vmul.f32 %v827_v6, %v397_v3 }
  0xc0   : > { %v420_v10 = vadd.f32 %v742_v63, %v409_v7  ;;  %v400_v11 = vmul.f32 %v829_v8, %v396_v5 }
  0xc1   : > { %v412_v12 = vmul.f32 %v741_v59, %v401_v9 }
  0xc2   : > { %v424_v13 = vpack.c.bf16 %v421_v1, %v420_v10  ;;  %v411_v14 = vmul.f32 %v741_v59, %v400_v11 }
  0xc3   : > { %v423_v15 = vadd.f32 %v742_v63, %v412_v12 }
  0xc4   : > { %777 = vmatprep.mubr.msk.bf16.mxu0 %vm336_vm0, %v424_v13  ;;  %v422_v16 = vadd.f32 %v742_v63, %v411_v14 }
  0xc6   : > { %v425_v17 = vpack.c.bf16 %v423_v15, %v422_v16 }
  0xc8   : > { %778 = vmatmul.mubr.msk.bf16.vlgmr.msra.gmra.mrb[0].mxu0 %vm336_vm0, %v425_v17 }
 0x19b   : > { %v779_v24 = vpop.f32.mrb[0].mxu0 }
 0x19c   : > { %v498_v25 = vadd.f32 %v779_v24, %v743_v23  ;;  %v489_v26 = vpop.f32.mrb[1].mxu0 }
 0x19d   : > { %v490_v27 = vadd.f32 %v743_v23, %v489_v26  ;;  %v780_v28 = vpop.f32.mrb[2].mxu0 }
 0x19e   : > { %v501_v29 = vadd.f32 %v780_v28, %v743_v23  ;;  %v492_v30 = vpop.f32.mrb[3].mxu0  ;;  %v506_v32 = vmax.f32 %v498_v25, 0.0 }
 0x19f   : > { %v493_v31 = vadd.f32 %v743_v23, %v492_v30  ;;  %v504_v34 = vmax.f32 %v490_v27, 0.0 }
 0x1a0   : > { %v507_v33 = vmax.f32 %v501_v29, 0.0 }
 0x1a1   : > { %v505_v35 = vmax.f32 %v493_v31, 0.0 }
 0x1a2   : > { %v509_v36 = vpack.c.bf16 %v507_v33, %v506_v32 }
 0x1a3   : > { %v508_v37 = vpack.c.bf16 %v505_v35, %v504_v34 }
 0x1a5   : > { %797 = vmatprep.mubr.bf16.mxu1 %v508_v37 }
 0x1a6   : > { %798 = vmatmul.mubr.bf16.vlgmr.msra.gmra.mrb[0].mxu1 %v509_v36 }
 0x279   : > { %v799_v41 = vpop.f32.mrb[0].mxu1 }
 0x27a   : > { %v624_v42 = vadd.f32 %v799_v41, %v748_v40  ;;  %v615_v43 = vpop.f32.mrb[1].mxu1 }
 0x27b   : > { %v616_v45 = vadd.f32 %v748_v40, %v615_v43  ;;  %v800_v46 = vpop.f32.mrb[2].mxu1 }
 0x27c   : > { %v656_v47 = vmul.f32 %v647_v39, %v624_v42  ;;  %v627_v48 = vadd.f32 %v800_v46, %v748_v40  ;;  %v618_v49 = vpop.f32.mrb[3].mxu1 }
 0x27d   : > { %v619_v51 = vadd.f32 %v748_v40, %v618_v49  ;;  %v654_v52 = vmul.f32 %v637_v44, %v616_v45 }
 0x27e   : > { %660 = vst.msk [vmem:[%s329_s25 + $0x10] sm:$0xff] %vm336_vm0, %v656_v47  ;;  %v657_v53 = vmul.f32 %v652_v50, %v627_v48 }
 0x27f   : > { %v655_v54 = vmul.f32 %v642_v38, %v619_v51  ;;  %658 = vst.msk [vmem:[%s329_s25] sm:$0xff] %vm336_vm0, %v654_v52 }
 0x280   : > { %661 = vst.msk [vmem:[%s329_s25 + $0x18] sm:$0xff] %vm336_vm0, %v657_v53 }
 0x281   : > { %659 = vst.msk [vmem:[%s329_s25 + $0x8] sm:$0xff] %vm336_vm0, %v655_v54 }
 0x282 PF: > { %s18_s27 = sadd.s32 1, %s836_s27  }
 0x283   : > { %p15_p4 = scmp.ge.s32.totalorder %s18_s27, 6  }
 0x285   :  { %17 = sbr.rel (!%p15_p4) target bundleno = 1 (0x1), region = 85 }

</bundles_post_ra>
